<compile_context>
chip_gen: v7x
topology: tpu7x:2x2x1
jax: 0.10.0
libtpu: 0.0.40
codegen_flags: <defaults>
</compile_context>

<pallas_src>
import math
import functools

import jax
import jax.numpy as jnp
from jax.experimental import pallas as pl
from jax.experimental.pallas import tpu as pltpu


def _round_up(x, m):
    return ((x + m - 1) // m) * m


def _cdiv(a, b):
    return (a + b - 1) // b


def _vmem_capacity_bytes():
    try:
        return int(pltpu.get_tpu_info().vmem_capacity_bytes)
    except Exception:
        return 64 * 1024 * 1024  # conservative fallback (v7x per-TC VMEM)


# ---------------------------------------------------------------------------
# Kernels
# ---------------------------------------------------------------------------

def _lora_kernel_1d(x_ref, a_ref, b_ref, o_ref, *, compute_dtype):
    # Full out_dim per batch tile: both GEMMs fused, no scratch, no pl.when.
    # x is read in its original dtype (single HBM pass) and cast in-register.
    xa = jnp.dot(x_ref[...].astype(compute_dtype), a_ref[...],
                 preferred_element_type=jnp.float32)
    out = jnp.dot(xa, b_ref[...].astype(jnp.float32),
                  preferred_element_type=jnp.float32)
    o_ref[...] = out.astype(o_ref.dtype)


def _lora_kernel_2d(x_ref, a_ref, b_ref, o_ref, xa_ref, *, compute_dtype):
    # out_dim is tiled: the first (long-K) GEMM runs once per batch tile and the
    # f32 result is cached in VMEM, reused for every out_dim tile.
    @pl.when(pl.program_id(1) == 0)
    def _():
        xa_ref[...] = jnp.dot(x_ref[...].astype(compute_dtype), a_ref[...],
                              preferred_element_type=jnp.float32)

    out = jnp.dot(xa_ref[...], b_ref[...].astype(jnp.float32),
                  preferred_element_type=jnp.float32)
    o_ref[...] = out.astype(o_ref.dtype)


# ---------------------------------------------------------------------------
# Tiling
# ---------------------------------------------------------------------------

def _choose_tiles(batch, in_dim, rank, out_dim, x_el, c_el, o_el,
                  capacity, max_tn=None):
    # x-tile budget keyed off the generation's VMEM (v7x: 64 MiB; v5e/v6e: 128 MiB).
    x_budget = (8 << 20) if capacity <= (64 << 20) else (20 << 20)
    tm_cap = max(8, (x_budget // max(2 * in_dim * x_el, 1)) // 8 * 8)
    tm = min(_round_up(batch, 8), 512, tm_cap)
    # Megacore: ensure the "parallel" batch axis has >= 2 tiles when there is work.
    if tm >= batch and batch > 8:
        tm = max(8, _round_up(_cdiv(batch, 2), 8))

    rank_p = max(_round_up(rank, 128), 128)
    tile_budget = max(capacity // 2 - (4 << 20), 8 << 20)

    def footprint(tn):
        tn_p = max(_round_up(tn, 128), 128)
        return (2 * tm * in_dim * x_el            # x tile, double-buffered
                + 2 * in_dim * rank_p * c_el      # A (resident, lane-padded)
                + 2 * rank_p * tn_p * c_el        # B tile, double-buffered
                + 2 * tm * tn_p * o_el            # out tile, double-buffered
                + tm * rank_p * 4)                # xa scratch (f32)

    tn_full = _round_up(out_dim, 128)
    tn_cap = tn_full if max_tn is None else max(128, _round_up(min(max_tn, tn_full), 128))

    if tn_cap >= tn_full and footprint(tn_full) <= tile_budget:
        return tm, None                            # 1-D grid: whole out_dim per step

    tn = min(tn_cap, 2048)
    while footprint(tn) > tile_budget and tn > 128:
        tn = max(128, _round_up(tn // 2, 128))
    return tm, tn


# ---------------------------------------------------------------------------
# Wrapper
# ---------------------------------------------------------------------------

def lora_forward(x, A, B, alpha, *, compute_dtype=jnp.bfloat16,
                 out_dtype=None, max_tn=None):
    batch, in_dim = x.shape
    rank, out_dim = B.shape
    assert A.shape == (in_dim, rank)
    out_dtype = x.dtype if out_dtype is None else jnp.dtype(out_dtype)

    x_el = jnp.dtype(x.dtype).itemsize
    c_el = jnp.dtype(compute_dtype).itemsize
    o_el = jnp.dtype(out_dtype).itemsize
    capacity = _vmem_capacity_bytes()

    tm, tn = _choose_tiles(batch, in_dim, rank, out_dim, x_el, c_el, o_el,
                           capacity, max_tn)

    # alpha folded into the tiny A on the host (in_dim x rank -> essentially free);
    # B is pre-cast once (small vs. x) so per-tile re-reads move half the bytes.
    ac = (A.astype(jnp.float32) * jnp.float32(alpha)).astype(compute_dtype)
    bc = B.astype(compute_dtype)

    n_i = _cdiv(batch, tm)

    if tn is None:
        grid = (n_i,)
        in_specs = [
            pl.BlockSpec((tm, in_dim), lambda i: (i, 0)),       # x tile (orig dtype)
            pl.BlockSpec((in_dim, rank), lambda i: (0, 0)),     # A (resident)
            pl.BlockSpec((rank, out_dim), lambda i: (0, 0)),    # B (resident)
        ]
        out_specs = pl.BlockSpec((tm, out_dim), lambda i: (i, 0))
        scratch_shapes = []
        kernel = functools.partial(_lora_kernel_1d, compute_dtype=compute_dtype)
        dim_sem = ("parallel",)
        eff_tn = _round_up(out_dim, 128)
    else:
        n_j = _cdiv(out_dim, tn)
        grid = (n_i, n_j)
        in_specs = [
            pl.BlockSpec((tm, in_dim), lambda i, j: (i, 0)),    # x: resident over j
            pl.BlockSpec((in_dim, rank), lambda i, j: (0, 0)),  # A: resident
            pl.BlockSpec((rank, tn), lambda i, j: (0, j)),      # B: out_dim tiles
        ]
        out_specs = pl.BlockSpec((tm, tn), lambda i, j: (i, j))
        scratch_shapes = [pltpu.VMEM((tm, rank), jnp.float32)]
        kernel = functools.partial(_lora_kernel_2d, compute_dtype=compute_dtype)
        dim_sem = ("parallel", "arbitrary")
        eff_tn = tn

    # Footprint-derived VMEM limit with headroom; never the full per-TC VMEM.
    rank_p = max(_round_up(rank, 128), 128)
    vmem_needed = (2 * tm * in_dim * x_el + 2 * in_dim * rank_p * c_el
                   + 2 * rank_p * eff_tn * c_el + 2 * tm * eff_tn * o_el
                   + tm * rank_p * 4)
    vmem_limit = int(min(max(2 * vmem_needed, 16 << 20), (capacity * 3) // 4))

    flops = 2 * batch * rank * (in_dim + out_dim)
    bytes_accessed = int(x.size * x_el + ac.size * c_el
                         + bc.size * c_el * n_i + batch * out_dim * o_el)

    out = pl.pallas_call(
        kernel,
        out_shape=jax.ShapeDtypeStruct((batch, out_dim), out_dtype),
        grid_spec=pltpu.PrefetchScalarGridSpec(
            num_scalar_prefetch=0,
            grid=grid,
            in_specs=in_specs,
            out_specs=out_specs,
            scratch_shapes=scratch_shapes,
        ),
        compiler_params=pltpu.CompilerParams(
            dimension_semantics=dim_sem,
            vmem_limit_bytes=vmem_limit,
        ),
        cost_estimate=pl.CostEstimate(
            flops=flops, transcendentals=0, bytes_accessed=bytes_accessed
        ),
    )(x, ac, bc)

    return out


def init_lora_params(key, in_dim, rank, out_dim, dtype=jnp.float32):
    # Matches torch.nn.init.kaiming_uniform_(A, a=sqrt(5)) on (in_dim, rank):
    # fan_in = rank, bound = 1/sqrt(rank).  B starts at zero (module init).
    bound = 1.0 / math.sqrt(rank)
    A = jax.random.uniform(key, (in_dim, rank), dtype, minval=-bound, maxval=bound)
    B = jnp.zeros((rank, out_dim), dtype)
    return A, B


if __name__ == "__main__":
    batch, in_dim, rank, out_dim = 8, 32, 8, 64
    alpha = 2.0

    key = jax.random.PRNGKey(0)
    k_x, k_a, k_b = jax.random.split(key, 3)

    x = jax.random.normal(k_x, (batch, in_dim), jnp.float32)
    A, B = init_lora_params(k_a, in_dim, rank, out_dim)

    # 1) Module-init semantics: B == 0 -> output exactly zero.
    out0 = jax.block_until_ready(lora_forward(x, A, B, alpha))
    assert out0.shape == (batch, out_dim)
    assert jnp.allclose(out0, jnp.zeros_like(out0))

    # 2) Non-zero B so both GEMMs are exercised (bf16 compute -> loose tolerance).
    B_rand = 0.1 * jax.random.normal(k_b, (rank, out_dim), jnp.float32)
    out = jax.block_until_ready(lora_forward(x, A, B_rand, alpha))
    ref = alpha * (x @ A @ B_rand)
    assert out.shape == (batch, out_dim)
    assert jnp.allclose(out, ref, atol=5e-2, rtol=5e-2), float(jnp.max(jnp.abs(out - ref)))

    # 3) 1-D-grid path with partial batch / out_dim blocks (no host-side padding;
    #    edge blocks rely on masked stores + OOB-read rows that are never kept).
    b2, d2, r2, o2 = 270, 96, 16, 600
    k1, k2, k3 = jax.random.split(jax.random.PRNGKey(1), 3)
    x2 = jax.random.normal(k1, (b2, d2), jnp.float32)
    A2 = jax.random.normal(k2, (d2, r2), jnp.float32) / math.sqrt(d2)
    B2 = jax.random.normal(k3, (r2, o2), jnp.float32) / math.sqrt(r2)
    out2 = jax.block_until_ready(lora_forward(x2, A2, B2, alpha))
    ref2 = alpha * (x2 @ A2 @ B2)
    rel2 = float(jnp.max(jnp.abs(out2 - ref2)) / (jnp.max(jnp.abs(ref2)) + 1e-6))
    assert out2.shape == (b2, o2)
    assert rel2 < 5e-2, rel2

    # 4) Force the 2-D tiled path (xa scratch + pl.when) with partial edge blocks
    #    on both grid axes via a small TN cap.
    b3, d3, r3, o3 = 40, 64, 8, 500
    k4, k5, k6 = jax.random.split(jax.random.PRNGKey(2), 3)
    x3 = jax.random.normal(k4, (b3, d3), jnp.float32)
    A3 = jax.random.normal(k5, (d3, r3), jnp.float32) / math.sqrt(d3)
    B3 = jax.random.normal(k6, (r3, o3), jnp.float32) / math.sqrt(r3)
    out3 = jax.block_until_ready(lora_forward(x3, A3, B3, alpha, max_tn=128))
    ref3 = alpha * (x3 @ A3 @ B3)
    rel3 = float(jnp.max(jnp.abs(out3 - ref3)) / (jnp.max(jnp.abs(ref3)) + 1e-6))
    assert out3.shape == (b3, o3)
    assert rel3 < 5e-2, rel3

    print("KERNEL_OK")
</pallas_src>

<mosaic_0001>
module attributes {stable_mosaic.version = 11 : i64} {
  func.func @_lora_kernel_1d(%arg0: i32, %arg1: memref<8x32xf32, #tpu.memory_space<vmem>>, %arg2: memref<32x8xbf16, #tpu.memory_space<vmem>>, %arg3: memref<8x64xbf16, #tpu.memory_space<vmem>>, %arg4: memref<8x64xf32, #tpu.memory_space<vmem>>) attributes {dimension_semantics = [#tpu.dimension_semantics<parallel>], iteration_bounds = array<i64: 1>, scalar_prefetch = 0 : i64, scratch_operands = 0 : i64, tpu.core_type = #tpu.core_type<tc>, window_params = [{transform_indices = @transform_0, window_bounds = array<i64: 8, 32>}, {pipeline_mode = #tpu.pipeline_mode<synchronous>, transform_indices = @transform_1, window_bounds = array<i64: 32, 8>}, {pipeline_mode = #tpu.pipeline_mode<synchronous>, transform_indices = @transform_2, window_bounds = array<i64: 8, 64>}, {transform_indices = @transform_3, window_bounds = array<i64: 8, 64>}]} {
    %c0 = arith.constant 0 : index
    %c0_0 = arith.constant 0 : index
    %0 = vector.load %arg1[%c0, %c0_0] : memref<8x32xf32, #tpu.memory_space<vmem>>, vector<8x32xf32>
    %1 = arith.truncf %0 : vector<8x32xf32> to vector<8x32xbf16>
    %c0_1 = arith.constant 0 : index
    %c0_2 = arith.constant 0 : index
    %2 = vector.load %arg2[%c0_1, %c0_2] : memref<32x8xbf16, #tpu.memory_space<vmem>>, vector<32x8xbf16>
    %cst = arith.constant dense<0.000000e+00> : vector<8x8xf32>
    %3 = tpu.matmul %1, %2, %cst {dimension_numbers = #tpu.dot_dimension_numbers<[1], [0], [0], [1], [0, 0, 1, 1], [], []>} : vector<8x32xbf16>, vector<32x8xbf16>, vector<8x8xf32> -> vector<8x8xf32>
    %c0_3 = arith.constant 0 : index
    %c0_4 = arith.constant 0 : index
    %4 = vector.load %arg3[%c0_3, %c0_4] : memref<8x64xbf16, #tpu.memory_space<vmem>>, vector<8x64xbf16>
    %5 = arith.extf %4 : vector<8x64xbf16> to vector<8x64xf32>
    %cst_5 = arith.constant dense<0.000000e+00> : vector<8x64xf32>
    %6 = tpu.matmul %3, %5, %cst_5 {dimension_numbers = #tpu.dot_dimension_numbers<[1], [0], [0], [1], [0, 0, 1, 1], [], []>} : vector<8x8xf32>, vector<8x64xf32>, vector<8x64xf32> -> vector<8x64xf32>
    %c0_6 = arith.constant 0 : index
    %c0_7 = arith.constant 0 : index
    %7 = vector.load %arg4[%c0_6, %c0_7] : memref<8x64xf32, #tpu.memory_space<vmem>>, vector<8x64xf32>
    tpu.vector_store %arg4[%c0_6, %c0_7], %6 {strides = array<i32>} : memref<8x64xf32, #tpu.memory_space<vmem>>, vector<8x64xf32>,
    return
  }
  func.func @transform_0(%arg0: i32) -> (i32, i32) {
    %c0_i32 = arith.constant 0 : i32
    %c0_i32_0 = arith.constant 0 : i32
    return %arg0, %c0_i32 : i32, i32
  }
  func.func @transform_1(%arg0: i32) -> (i32, i32) {
    %c0_i32 = arith.constant 0 : i32
    %c0_i32_0 = arith.constant 0 : i32
    %c0_i32_1 = arith.constant 0 : i32
    return %c0_i32, %c0_i32_0 : i32, i32
  }
  func.func @transform_2(%arg0: i32) -> (i32, i32) {
    %c0_i32 = arith.constant 0 : i32
    %c0_i32_0 = arith.constant 0 : i32
    %c0_i32_1 = arith.constant 0 : i32
    return %c0_i32, %c0_i32_0 : i32, i32
  }
  func.func @transform_3(%arg0: i32) -> (i32, i32) {
    %c0_i32 = arith.constant 0 : i32
    %c0_i32_0 = arith.constant 0 : i32
    return %arg0, %c0_i32 : i32, i32
  }
}

</mosaic_0001>

<bundles_post_ra>
// kernel: tpu_custom_call.1
= control target key start
LH: loop header
LB: loop body
LE: loop exit
PB: predicated region body
PF: predicated region fallthrough
CT: control target
= control target key end

     0   :  { %v221_v1 = vmov 0.0   ;;  %vm222_vm0 = vmmov 0   ;;  %s268_s0 = inlined_call_operand.vmem [shape: f32[8,32], index: 0, kind: input, shape index: {}]   ;;  %s269_s1 = inlined_call_operand.vmem [shape: bf16[32,8], index: 1, kind: input, shape index: {}]   ;;  %s270_s2 = inlined_call_operand.vmem [shape: bf16[8,64], index: 2, kind: input, shape index: {}]   ;;  %s271_s3 = inlined_call_operand.hbm [shape: f32[8,64], index: 3, kind: output, shape index: {}]  }
   0x1   :  { %v195_v0 = vld [vmem:[%s269_s1] sm:$0xff]   ;;  %179 = vmatprep.subr.bf16.mxu0 %v221_v1  ;;  %187 = vmatprep.subr.mxu1 %v221_v1  ;;  %v196_v2 = vld [vmem:[%s269_s1 + $0x8] sm:$0xff]  }
   0x2   :  { %180 = vmatpush3.bf16.msra.mxu0 %v195_v0  ;;  %183 = vmatprep.mubr.msk.bf16.mxu0 %vm222_vm0, %v221_v1  ;;  %v16_v3 = vld [vmem:[%s268_s0] sm:$0xff] }
   0x3   :  { %8 = vsyncpa [#allocation3], 0  ;;  %181 = vmatprep.subr.bf16.mxu0 %v221_v1  ;;  %189 = vmatprep.mubr.msk.f32.mxu1 %vm222_vm0, %v221_v1  ;;  %v17_v4 = vpack.c.bf16 %v16_v3, %v16_v3  ;;  %vm34_vm1 = vcmask 261120   ;;  %v78_v5 = vld [vmem:[%s270_s2] sm:$0xf]  ;;  %vm80_vm2 = vcmask 64512  }
   0x4   :  { %v79_v6 = vunpack.c.l.bf16 %v78_v5  ;;  %s223_s0 = smov [#allocation2]   ;;  %vm154_vm3 = vcmask 523264  }
   0x5   :  { %s162_s1 = sshll.u32 %s223_s0, 4  ;;  %s163_s1 = int_to_ptr.vmem [resolvable:$true] %s162_s1 }
   0x6   :  { %182 = vmatpush3.bf16.msra.mxu0 %v196_v2  ;;  %188 = vmatpush3.msra.mxu1 %v79_v6  ;;  %s197_s20 = scalar_lea.vmem %s163_s1, 128  ;;  %p202_p1 = scmp.lt.s32.totalorder %s163_s1, %s163_s1 }
   0x7   :  { %p198_p0 = scmp.ne.s32.totalorder %s163_s1, %s197_s20  ;;  %p203_p2 = scmp.lt.s32.totalorder %s197_s20, %s197_s20 }
   0x9   :  { %184 = vmatmul.mubr.msk.bf16.vlgmr.msra.gmra.mrb[0].mxu0 %vm34_vm1, %v17_v4  ;;  %p204_p3 = por %p203_p2, %p202_p1 }
   0xb   :  { %p205_p4 = pnand %p204_p3, %p198_p0 }
  0xdc   :  { %v72_v7 = vpop.f32.mrb[0].mxu0 }
  0xdd   :  { %v185_v8 = vpop.f32.mrb[1].mxu0  ;;  %190 = vmatmul.mubr.msk.f32.vlgmr.msra.gmra.mrb[0].mxu1 %vm80_vm2, %v72_v7 }
  0xde   :  { %v75_v9 = vpop.f32.mrb[2].mxu0 }
  0xdf   :  { %v186_v10 = vpop.f32.mrb[3].mxu0 }
 0x1b0   :  { %v150_v11 = vpop.f32.mrb[0].mxu1 }
 0x1b1   :  { %155 = vst.msk [vmem:[#allocation2] sm:$0xff] %vm154_vm3, %v150_v11  ;;  %v191_v12 = vpop.f32.mrb[1].mxu1 }
 0x1b2   :  { %208 = shalt.err (!%p205_p4)
}
 0x1b3   :  { %s209_s22 = scalar_lea.hbm %s271_s3, 128 }
 0x1b4   :  { %p210_p5 = scmp.ne.s32.totalorder %s271_s3, %s209_s22  ;;  %p213_p6 = scmp.lt.u32.totalorder %s209_s22, %s271_s3 }
 0x1b6   :  { %p215_p7 = pnand %p213_p6, %p210_p5 }
 0x1b8   :  { %218 = shalt.err (!%p215_p7)
}
 0x1b9   :  { %165 = dma.vmem_to_hbm [thread:$0]  %s163_s1, 128, %s271_s3, [#allocation3]  }
 0x1ba   :  { %219 = dma.done.wait [#allocation3], 128  }
 0x1bb   :  { %220 = vsyncadd [#allocation3], 4294967168 }
 0x1bc   :  { %169 = vsyncpa [#allocation3], 1 }

</bundles_post_ra>
